<compile_context>
chip_gen: v7x
topology: tpu7x:2x2x1
jax: 0.10.0
libtpu: 0.0.40
codegen_flags: <defaults>
</compile_context>

<pallas_src>
from functools import partial

import numpy as np
import jax
import jax.numpy as jnp
from jax.experimental import pallas as pl
from jax.experimental.pallas import tpu as pltpu


def make_bands(num_freq, max_freq_log2, log_sampling=True, base_freq=2, use_pi=True):
    """Deterministic band init, identical to NeRFEncoding.__init__ (returns numpy)."""
    if log_sampling:
        bands = float(base_freq) ** np.linspace(0.0, max_freq_log2, num_freq)
    else:
        bands = np.linspace(1.0, float(base_freq) ** max_freq_log2, num_freq)
    if use_pi:
        bands = bands * np.pi
    return np.asarray(bands, dtype=np.float32)


def _round_up(x, m):
    return ((x + m - 1) // m) * m


def _nerf_enc_kernel(coords_ref, out_ref, *, bands, include_input, use_recurrence):
    # coords_ref: [D, TILE_M] f32     out_ref: [out_dim, TILE_M] (f32 or bf16)
    coords = coords_ref[...]
    D = coords_ref.shape[0]
    F = len(bands)
    odt = out_ref.dtype
    off = D if include_input else 0

    if include_input:
        out_ref[0:D, :] = coords.astype(odt)

    if use_recurrence:
        # Bands are exact octaves: sin/cos of the base band only (EUP/VALU
        # transcendentals), then double-angle recurrence for higher bands.
        w0 = coords * bands[0]
        s = jnp.sin(w0)
        c = jnp.cos(w0)
        for f in range(F):
            if f > 0:
                s, c = 2.0 * s * c, 1.0 - 2.0 * (s * s)   # old s,c on RHS
            out_ref[off + f * D: off + (f + 1) * D, :] = s.astype(odt)
            out_ref[off + (F + f) * D: off + (F + f + 1) * D, :] = c.astype(odt)
    else:
        for f in range(F):
            w = coords * bands[f]                          # scalar-const multiply
            out_ref[off + f * D: off + (f + 1) * D, :] = jnp.sin(w).astype(odt)
            out_ref[off + (F + f) * D: off + (F + f + 1) * D, :] = jnp.cos(w).astype(odt)


def nerf_encoding(coords, bands, *, include_input=True, tile_m=32768,
                  out_dtype=jnp.float32, channel_first=False,
                  allow_octave_recurrence=True):
    """NeRF positional encoding.

    coords: [N, T, D] float; bands: numpy [F].
    Returns [N, T, out_dim] (module layout) or, with channel_first=True,
    [out_dim, N*T] (kernel-native layout, no wrapper transpose).
    """
    N, T, D = coords.shape
    bands = np.asarray(bands, dtype=np.float32)
    F = int(bands.shape[0])
    M = N * T
    out_dim = (D if include_input else 0) + 2 * F * D

    # Octave check: consecutive band ratio exactly 2 -> double-angle recurrence.
    use_recurrence = (
        allow_octave_recurrence and F > 1
        and np.allclose(bands[1:], 2.0 * bands[:-1], rtol=1e-6, atol=0.0)
    )

    # Tile sizing: multiple of 128 lanes, <= tile_m, and split into >=2 grid
    # steps when M allows so both v7x TensorCores get work.
    tile = min(_round_up(tile_m, 128), max(128, _round_up(pl.cdiv(M, 2), 128)))
    m_pad = pl.cdiv(M, tile) * tile

    # Lane-dense transposed input layout: [D, M_pad] (cheap vs. output traffic).
    # TODO(synk): accept coords already channel-first ([D, N*T]) to skip this relayout.
    coords_t = jnp.asarray(coords, jnp.float32).reshape(M, D).T        # [D, M]
    if m_pad != M:
        coords_t = jnp.pad(coords_t, ((0, 0), (0, m_pad - M)))

    kernel = partial(
        _nerf_enc_kernel,
        bands=tuple(float(b) for b in bands),
        include_input=include_input,
        use_recurrence=use_recurrence,
    )
    # TODO(synk): on v6e, if xprof shows exposed output DMA at step boundaries,
    # add pipeline_mode=pl.Buffered(3) to out_specs (VMEM permits it there).
    out_t = pl.pallas_call(
        kernel,
        out_shape=jax.ShapeDtypeStruct((out_dim, m_pad), out_dtype),
        grid=(m_pad // tile,),
        in_specs=[pl.BlockSpec((D, tile), lambda i: (0, i))],
        out_specs=pl.BlockSpec((out_dim, tile), lambda i: (0, i)),
        compiler_params=pltpu.CompilerParams(
            dimension_semantics=("parallel",),
            vmem_limit_bytes=32 * 1024 * 1024,
        ),
    )(coords_t)

    if channel_first:
        # Kernel-native layout: feed this straight into the consumer (e.g. as
        # the K-major operand of the first Linear) to avoid any transpose.
        return out_t[:, :M]
    return out_t[:, :M].T.reshape(N, T, out_dim)


def nerf_encoding_ref(coords, bands, include_input=True):
    """Pure-JAX reference mirroring the torch forward (with_batch=True)."""
    N, T, D = coords.shape
    bands = jnp.asarray(bands, dtype=jnp.float32)
    F = bands.shape[0]
    winded = (coords[..., None, :] * bands[None, None, :, None]).reshape(N, T, D * F)
    enc = jnp.concatenate([jnp.sin(winded), jnp.cos(winded)], axis=-1)
    if include_input:
        enc = jnp.concatenate([coords, enc], axis=-1)
    return enc


if __name__ == "__main__":
    # Small shapes consistent with the module: batch N=2, tokens T=8, input_dim=3.
    num_freq = 4
    max_freq_log2 = 3
    input_dim = 3
    N, T = 2, 8

    key = jax.random.PRNGKey(0)
    coords = jax.random.uniform(key, (N, T, input_dim), dtype=jnp.float32,
                                minval=-1.0, maxval=1.0)
    bands = make_bands(num_freq, max_freq_log2, log_sampling=True,
                       base_freq=2, use_pi=True)
    out_dim = input_dim + 2 * num_freq * input_dim

    ref = jax.block_until_ready(nerf_encoding_ref(coords, bands))

    # 1) f32, module layout (default; matches torch semantics).
    out = jax.block_until_ready(nerf_encoding(coords, bands))
    assert out.shape == (N, T, out_dim)
    np.testing.assert_allclose(np.asarray(out), np.asarray(ref), rtol=1e-5, atol=2e-5)

    # 2) bf16 output (halves HBM write traffic) — looser tolerance.
    out_bf16 = jax.block_until_ready(
        nerf_encoding(coords, bands, out_dtype=jnp.bfloat16))
    np.testing.assert_allclose(np.asarray(out_bf16).astype(np.float32),
                               np.asarray(ref), rtol=1e-2, atol=1e-2)

    # 3) channel-first output (kernel-native [out_dim, N*T], no wrapper transpose).
    out_cf = jax.block_until_ready(
        nerf_encoding(coords, bands, channel_first=True))
    ref_cf = np.asarray(ref).reshape(N * T, out_dim).T
    np.testing.assert_allclose(np.asarray(out_cf), ref_cf, rtol=1e-5, atol=2e-5)

    # 4) include_input=False path.
    out_ni = jax.block_until_ready(
        nerf_encoding(coords, bands, include_input=False))
    ref_ni = jax.block_until_ready(nerf_encoding_ref(coords, bands, include_input=False))
    np.testing.assert_allclose(np.asarray(out_ni), np.asarray(ref_ni),
                               rtol=1e-5, atol=2e-5)

    print("KERNEL_OK")
</pallas_src>

<mosaic_0001>
module attributes {stable_mosaic.version = 11 : i64} {
  func.func @_nerf_enc_kernel(%arg0: i32, %arg1: memref<3x128xf32, #tpu.memory_space<vmem>>, %arg2: memref<27x128xf32, #tpu.memory_space<vmem>>) attributes {dimension_semantics = [#tpu.dimension_semantics<parallel>], iteration_bounds = array<i64: 1>, scalar_prefetch = 0 : i64, scratch_operands = 0 : i64, tpu.core_type = #tpu.core_type<tc>, window_params = [{transform_indices = @transform_0, window_bounds = array<i64: 3, 128>}, {transform_indices = @transform_1, window_bounds = array<i64: 27, 128>}]} {
    %c0 = arith.constant 0 : index
    %c0_0 = arith.constant 0 : index
    %0 = vector.load %arg1[%c0, %c0_0] : memref<3x128xf32, #tpu.memory_space<vmem>>, vector<3x128xf32>
    %c0_1 = arith.constant 0 : index
    %c0_2 = arith.constant 0 : index
    %1 = vector.load %arg2[%c0_1, %c0_2] : memref<27x128xf32, #tpu.memory_space<vmem>>, vector<3x128xf32>
    tpu.vector_store %arg2[%c0_1, %c0_2], %0 {strides = array<i32>} : memref<27x128xf32, #tpu.memory_space<vmem>>, vector<3x128xf32>,
    %cst = arith.constant 3.14159274 : f32
    %2 = vector.broadcast %cst : f32 to vector<3x128xf32>
    %3 = arith.mulf %0, %2 : vector<3x128xf32>
    %4 = math.sin %3 : vector<3x128xf32>
    %5 = math.cos %3 : vector<3x128xf32>
    %c3 = arith.constant 3 : index
    %c0_3 = arith.constant 0 : index
    %6 = vector.load %arg2[%c3, %c0_3] : memref<27x128xf32, #tpu.memory_space<vmem>>, vector<3x128xf32>
    tpu.vector_store %arg2[%c3, %c0_3], %4 {strides = array<i32>} : memref<27x128xf32, #tpu.memory_space<vmem>>, vector<3x128xf32>,
    %c15 = arith.constant 15 : index
    %c0_4 = arith.constant 0 : index
    %7 = vector.load %arg2[%c15, %c0_4] : memref<27x128xf32, #tpu.memory_space<vmem>>, vector<3x128xf32>
    tpu.vector_store %arg2[%c15, %c0_4], %5 {strides = array<i32>} : memref<27x128xf32, #tpu.memory_space<vmem>>, vector<3x128xf32>,
    %cst_5 = arith.constant 2.000000e+00 : f32
    %8 = vector.broadcast %cst_5 : f32 to vector<3x128xf32>
    %9 = arith.mulf %8, %4 : vector<3x128xf32>
    %10 = arith.mulf %9, %5 : vector<3x128xf32>
    %11 = arith.mulf %4, %4 : vector<3x128xf32>
    %cst_6 = arith.constant 2.000000e+00 : f32
    %12 = vector.broadcast %cst_6 : f32 to vector<3x128xf32>
    %13 = arith.mulf %12, %11 : vector<3x128xf32>
    %cst_7 = arith.constant 1.000000e+00 : f32
    %14 = vector.broadcast %cst_7 : f32 to vector<3x128xf32>
    %15 = arith.subf %14, %13 : vector<3x128xf32>
    %c6 = arith.constant 6 : index
    %c0_8 = arith.constant 0 : index
    %16 = vector.load %arg2[%c6, %c0_8] : memref<27x128xf32, #tpu.memory_space<vmem>>, vector<3x128xf32>
    tpu.vector_store %arg2[%c6, %c0_8], %10 {strides = array<i32>} : memref<27x128xf32, #tpu.memory_space<vmem>>, vector<3x128xf32>,
    %c18 = arith.constant 18 : index
    %c0_9 = arith.constant 0 : index
    %17 = vector.load %arg2[%c18, %c0_9] : memref<27x128xf32, #tpu.memory_space<vmem>>, vector<3x128xf32>
    tpu.vector_store %arg2[%c18, %c0_9], %15 {strides = array<i32>} : memref<27x128xf32, #tpu.memory_space<vmem>>, vector<3x128xf32>,
    %cst_10 = arith.constant 2.000000e+00 : f32
    %18 = vector.broadcast %cst_10 : f32 to vector<3x128xf32>
    %19 = arith.mulf %18, %10 : vector<3x128xf32>
    %20 = arith.mulf %19, %15 : vector<3x128xf32>
    %21 = arith.mulf %10, %10 : vector<3x128xf32>
    %cst_11 = arith.constant 2.000000e+00 : f32
    %22 = vector.broadcast %cst_11 : f32 to vector<3x128xf32>
    %23 = arith.mulf %22, %21 : vector<3x128xf32>
    %cst_12 = arith.constant 1.000000e+00 : f32
    %24 = vector.broadcast %cst_12 : f32 to vector<3x128xf32>
    %25 = arith.subf %24, %23 : vector<3x128xf32>
    %c9 = arith.constant 9 : index
    %c0_13 = arith.constant 0 : index
    %26 = vector.load %arg2[%c9, %c0_13] : memref<27x128xf32, #tpu.memory_space<vmem>>, vector<3x128xf32>
    tpu.vector_store %arg2[%c9, %c0_13], %20 {strides = array<i32>} : memref<27x128xf32, #tpu.memory_space<vmem>>, vector<3x128xf32>,
    %c21 = arith.constant 21 : index
    %c0_14 = arith.constant 0 : index
    %27 = vector.load %arg2[%c21, %c0_14] : memref<27x128xf32, #tpu.memory_space<vmem>>, vector<3x128xf32>
    tpu.vector_store %arg2[%c21, %c0_14], %25 {strides = array<i32>} : memref<27x128xf32, #tpu.memory_space<vmem>>, vector<3x128xf32>,
    %cst_15 = arith.constant 2.000000e+00 : f32
    %28 = vector.broadcast %cst_15 : f32 to vector<3x128xf32>
    %29 = arith.mulf %28, %20 : vector<3x128xf32>
    %30 = arith.mulf %29, %25 : vector<3x128xf32>
    %31 = arith.mulf %20, %20 : vector<3x128xf32>
    %cst_16 = arith.constant 2.000000e+00 : f32
    %32 = vector.broadcast %cst_16 : f32 to vector<3x128xf32>
    %33 = arith.mulf %32, %31 : vector<3x128xf32>
    %cst_17 = arith.constant 1.000000e+00 : f32
    %34 = vector.broadcast %cst_17 : f32 to vector<3x128xf32>
    %35 = arith.subf %34, %33 : vector<3x128xf32>
    %c12 = arith.constant 12 : index
    %c0_18 = arith.constant 0 : index
    %36 = vector.load %arg2[%c12, %c0_18] : memref<27x128xf32, #tpu.memory_space<vmem>>, vector<3x128xf32>
    tpu.vector_store %arg2[%c12, %c0_18], %30 {strides = array<i32>} : memref<27x128xf32, #tpu.memory_space<vmem>>, vector<3x128xf32>,
    %c24 = arith.constant 24 : index
    %c0_19 = arith.constant 0 : index
    %37 = vector.load %arg2[%c24, %c0_19] : memref<27x128xf32, #tpu.memory_space<vmem>>, vector<3x128xf32>
    tpu.vector_store %arg2[%c24, %c0_19], %35 {strides = array<i32>} : memref<27x128xf32, #tpu.memory_space<vmem>>, vector<3x128xf32>,
    return
  }
  func.func @transform_0(%arg0: i32) -> (i32, i32) {
    %c0_i32 = arith.constant 0 : i32
    %c0_i32_0 = arith.constant 0 : i32
    return %c0_i32, %arg0 : i32, i32
  }
  func.func @transform_1(%arg0: i32) -> (i32, i32) {
    %c0_i32 = arith.constant 0 : i32
    %c0_i32_0 = arith.constant 0 : i32
    return %c0_i32, %arg0 : i32, i32
  }
}

</mosaic_0001>

<bundles_post_ra>
// kernel: tpu_custom_call.1
= control target key start
LH: loop header
LB: loop body
LE: loop exit
PB: predicated region body
PF: predicated region fallthrough
CT: control target
= control target key end

     0   :  { %6 = vsyncpa [#allocation3], 0  ;;  %s410_s0 = inlined_call_operand.hbm [shape: f32[3,128], index: 0, kind: input, shape index: {}]   ;;  %s411_s1 = inlined_call_operand.hbm [shape: f32[27,128], index: 1, kind: output, shape index: {}]  }
   0x1   :  { %7 = vsyncpa [#allocation4], 0  ;;  %s345_s6 = smov [#allocation2]   ;;  %s297_s10 = scalar_lea.hbm %s410_s0, 64 }
   0x2   :  { %s14_s7 = sshll.u32 %s345_s6, 4  ;;  %p298_p0 = scmp.ne.s32.totalorder %s410_s0, %s297_s10  ;;  %s15_s7 = int_to_ptr.vmem [resolvable:$true] %s14_s7 }
   0x3   :  { %p301_p1 = scmp.lt.u32.totalorder %s297_s10, %s410_s0 }
   0x5   :  { %p303_p2 = pnand %p301_p1, %p298_p0 }
   0x7   :  { %306 = shalt.err (!%p303_p2)
}
   0x8   :  { %s307_s15 = scalar_lea.vmem %s15_s7, 64  ;;  %p312_p4 = scmp.lt.s32.totalorder %s15_s7, %s15_s7 }
   0x9   :  { %p308_p3 = scmp.ne.s32.totalorder %s15_s7, %s307_s15  ;;  %p313_p5 = scmp.lt.s32.totalorder %s307_s15, %s307_s15 }
   0xb   :  { %p314_p6 = por %p313_p5, %p312_p4 }
   0xd   :  { %p315_p7 = pnand %p314_p6, %p308_p3 }
   0xf   :  { %318 = shalt.err (!%p315_p7)
}
  0x10   :  { %17 = dma.hbm_to_vmem [thread:$0]  %s410_s0, 64, %s15_s7, [#allocation3]  }
  0x11   :  { %341 = dma.done.wait [#allocation3], 64  }
  0x12   :  { %342 = vsyncadd [#allocation3], 4294967232  ;;  %v21_v0 = vld [vmem:[#allocation2] sm:$0x7]  ;;  %v346_v12 = vmov 2102212464  }
  0x13   :  { %22 = vst [vmem:[#allocation5] sm:$0x7] %v21_v0  ;;  %v377_v1 = vmul.f32 3.1415927, %v21_v0  ;;  %v347_v14 = vmov 920167782  }
  0x14   :  { %v348_v17 = vmov 683565275   ;;  %v349_v19 = vmov 2475754826   ;;  %v350_v21 = vmov 2131351028  }
  0x15   :  { %v27_v2 = vand.u32 2139095040, %v377_v1  ;;  %v24_v5 = vand.u32 2147483647, %v377_v1  ;;  %v351_v24 = vmov 1326507024   ;;  %vm26_vm7 = vcmp.lt.s32.totalorder %v377_v1, 0 }
  0x16   :  { %vm116_vm15 = vweird.f32 %v377_v1  ;;  %s352_s0 = smov [#allocation5]  }
  0x17   :  { %v28_v3 = vshrl.u32 %v27_v2, 23  ;;  %v31_v8 = vand.u32 8388607, %v24_v5  ;;  %vm25_vm8 = vcmp.le.f32.partialorder %v24_v5, 0.7853982  ;;  %s259_s18 = sshll.u32 %s352_s0, 4  ;;  %s260_s18 = int_to_ptr.vmem [resolvable:$true] %s259_s18 }
  0x18   :  { %s319_s19 = scalar_lea.vmem %s260_s18, 512  ;;  %p324_p9 = scmp.lt.s32.totalorder %s260_s18, %s260_s18 }
  0x19   :  { %v271_v4 = vadd.s32 4294967169, %v28_v3  ;;  %v32_v16 = vor.u32 8388608, %v31_v8  ;;  %p320_p8 = scmp.ne.s32.totalorder %s260_s18, %s319_s19  ;;  %p325_p10 = scmp.lt.s32.totalorder %s319_s19, %s319_s19 }
  0x1b   :  { %v34_v6 = vadd.s32 1, %v271_v4  ;;  %v72_v35 = vshll.u32 %v32_v16, 8  ;;  %p326_p11 = por %p325_p10, %p324_p9 }
  0x1d   :  { %vm35_vm0 = vcmp.gt.s32.totalorder %v34_v6, 0  ;;  %p327_p12 = pnand %p326_p11, %p320_p8 }
  0x1e   :  { %v36_v7 = vsel %vm35_vm0, %v34_v6, 0 }
  0x1f   :  { %v38_v9 = vand.u32 31, %v36_v7  ;;  %v37_v10 = vshrl.u32 %v36_v7, 5 }
  0x21   :  { %v39_v11 = vsub.s32 32, %v38_v9  ;;  %v50_v13 = vshll.u32 %v346_v12, %v38_v9  ;;  %v53_v15 = vshll.u32 %v347_v14, %v38_v9  ;;  %v41_v18 = vshll.u32 %v348_v17, %v38_v9 }
  0x22   :  { %v44_v20 = vshll.u32 %v349_v19, %v38_v9  ;;  %v47_v22 = vshll.u32 %v350_v21, %v38_v9  ;;  %vm59_vm1 = vcmp.lt.s32.totalorder %v37_v10, 4  ;;  %vm56_vm2 = vcmp.lt.s32.totalorder %v37_v10, 1 }
  0x23   :  { %v51_v23 = vshrl.u32 %v347_v14, %v39_v11  ;;  %v54_v25 = vshrl.u32 %v351_v24, %v39_v11  ;;  %v40_v26 = vshrl.u32 %v348_v17, %v39_v11  ;;  %v42_v27 = vshrl.u32 %v349_v19, %v39_v11 }
  0x24   :  { %v45_v28 = vshrl.u32 %v350_v21, %v39_v11  ;;  %v48_v29 = vshrl.u32 %v346_v12, %v39_v11  ;;  %vm58_vm3 = vcmp.lt.s32.totalorder %v37_v10, 3  ;;  %vm57_vm4 = vcmp.lt.s32.totalorder %v37_v10, 2 }
  0x25   :  { %v52_v30 = vor.u32 %v51_v23, %v50_v13  ;;  %v55_v31 = vor.u32 %v54_v25, %v53_v15  ;;  %v43_v32 = vor.u32 %v42_v27, %v41_v18 }
  0x26   :  { %v46_v33 = vor.u32 %v45_v28, %v44_v20  ;;  %v49_v34 = vor.u32 %v48_v29, %v47_v22 }
  0x27   :  { %v65_v36 = vsel %vm59_vm1, %v52_v30, 920167782  ;;  %v69_v37 = vsel %vm59_vm1, %v55_v31, 1326507024  ;;  %v60_v38 = vsel %vm56_vm2, %v40_v26, %v43_v32 }
  0x28   :  { %v61_v39 = vsel %vm59_vm1, %v49_v34, 2102212464  ;;  %v64_v40 = vsel %vm56_vm2, %v43_v32, %v46_v33  ;;  %v66_v41 = vsel %vm58_vm3, %v49_v34, %v65_v36  ;;  %v68_v42 = vsel %vm56_vm2, %v46_v33, %v49_v34 }
  0x29   :  { %v62_v43 = vsel %vm58_vm3, %v46_v33, %v61_v39  ;;  %v67_v44 = vsel %vm57_vm4, %v64_v40, %v66_v41  ;;  %v70_v45 = vsel %vm58_vm3, %v52_v30, %v69_v37 }
  0x2a   :  { %v63_v46 = vsel %vm57_vm4, %v60_v38, %v62_v43  ;;  %v71_v47 = vsel %vm57_vm4, %v68_v42, %v70_v45  ;;  %v383_v48 = vmul.u32.u64.low %v72_v35, %v67_v44  ;;  %v384_v49 = vmul.u32.u64.high %v72_v35, %v67_v44, %v383_v48 }
  0x2b   :  { %v386_v50 = vmul.u32.u64.low %v72_v35, %v71_v47  ;;  %v387_v51 = vmul.u32.u64.high %v72_v35, %v71_v47, %v386_v50  ;;  %v79_v52 = vmul.u32 %v72_v35, %v63_v46 }
  0x2c   :  { %v82_v53 = vadd.s32 1, %v384_v49 }
  0x2d   :  { %vm81_vm5 = vc.u32 %v387_v51, %v383_v48  ;;  %v80_v0 = vadd.s32 %v383_v48, %v387_v51 }
  0x2e   :  { %v83_v54 = vsel %vm81_vm5, %v82_v53, %v384_v49 }
  0x2f   :  { %v84_v55 = vadd.s32 %v83_v54, %v79_v52 }
  0x31   :  { %v85_v56 = vadd.s32 536870912, %v84_v55 }
  0x33   :  { %v86_v57 = vshrl.u32 %v85_v56, 30 }
  0x35   :  { %v87_v58 = vshll.u32 %v86_v57, 30  ;;  %v110_v14 = vsub.s32 4, %v86_v57 }
  0x37   :  { %v88_v59 = vsub.s32 %v84_v55, %v87_v58  ;;  %v111_v17 = vsel %vm26_vm7, %v110_v14, %v86_v57 }
  0x38   :  { %v113_v20 = vsel %vm25_vm8, 0, %v111_v17 }
  0x39   :  { %v90_v60 = vsub.s32 0, %v88_v59  ;;  %v117_v21 = vadd.s32 3, %v113_v20  ;;  %v221_v23 = vand.u32 3, %v113_v20 }
  0x3b   :  { %v272_v61 = vmin.u32 %v90_v60, %v88_v59  ;;  %v118_v22 = vand.u32 3, %v117_v21  ;;  %vm226_vm10 = vcmp.eq.s32.totalorder %v221_v23, 2  ;;  %vm223_vm12 = vcmp.eq.s32.totalorder %v221_v23, 0 }
  0x3c   :  { %vm222_vm14 = vcmp.lt.s32.totalorder %v221_v23, 2 }
  0x3d   :  { %v92_v62 = vclz %v272_v61  ;;  %vm123_vm9 = vcmp.eq.s32.totalorder %v118_v22, 2  ;;  %vm120_vm11 = vcmp.eq.s32.totalorder %v118_v22, 0  ;;  %vm119_vm13 = vcmp.lt.s32.totalorder %v118_v22, 2 }
  0x3f   :  { %v273_v63 = vadd.s32 4294967294, %v92_v62 }
  0x41   :  { %vm274_vm6 = vcmp.lt.s32.totalorder %v273_v63, 0 }
  0x42   :  { %v95_v2 = vsel %vm274_vm6, 0, %v273_v63 }
  0x43   :  { %v96_v3 = vsub.s32 32, %v95_v2  ;;  %v97_v4 = vshll.u32 %v88_v59, %v95_v2  ;;  %v100_v6 = vsub.s32 4294967266, %v95_v2 }
  0x45   :  { %v98_v7 = vshrl.u32 %v80_v0, %v96_v3  ;;  %v101_v8 = vadd.s32 127, %v100_v6 }
  0x47   :  { %v99_v9 = vor.u32 %v98_v7, %v97_v4  ;;  %v102_v10 = vshll.u32 %v101_v8, 23 }
  0x49   :  { %v103_v11 = vor.u32 4788187, %v102_v10  ;;  %v106_v12 = vcvt.s32.f32 %v99_v9 }
  0x4b   :  { %v104_v13 = vand.u32 2147483647, %v103_v11 }
  0x4d   :  { %v107_v15 = vmul.f32 %v106_v12, %v104_v13 }
  0x4f   :  { %v108_v16 = vxor.u32 2147483648, %v107_v15 }
  0x51   :  { %v109_v18 = vsel %vm26_vm7, %v108_v16, %v107_v15 }
  0x52   :  { %v112_v19 = vsel %vm25_vm8, %v377_v1, %v109_v18 }
  0x53   :  { %293 = vcosq.f32 %v112_v19 }
  0x54   :  { %295 = vsinq.f32 %v112_v19 }
  0x5d   :  { %v294_v24 = vpop.eup %293 }
  0x5e   :  { %v296_v25 = vpop.eup %295  ;;  %v124_v26 = vxor.u32 2147483648, %v294_v24 }
  0x5f   :  { %v121_v5 = vxor.u32 2147483648, %v296_v25 }
  0x60   :  { %v125_v27 = vsel %vm123_vm9, %v124_v26, %v296_v25  ;;  %v228_v28 = vsel %vm226_vm10, %v124_v26, %v296_v25 }
  0x61   :  { %v122_v29 = vsel %vm120_vm11, %v294_v24, %v121_v5  ;;  %v225_v30 = vsel %vm223_vm12, %v294_v24, %v121_v5 }
  0x62   :  { %v126_v31 = vsel %vm119_vm13, %v122_v29, %v125_v27  ;;  %v229_v32 = vsel %vm222_vm14, %v225_v30, %v228_v28 }
  0x63   :  { %v127_v33 = vsel %vm116_vm15, nan, %v126_v31  ;;  %v230_v34 = vsel %vm116_vm15, nan, %v229_v32 }
  0x64   :  { %231 = vst [vmem:[#allocation5 + $0x3] sm:$0x7] %v127_v33  ;;  %232 = vst [vmem:[#allocation5 + $0xf] sm:$0x7] %v230_v34  ;;  %v233_v35 = vmul.f32 2.0, %v127_v33  ;;  %v235_v36 = vmul.f32 %v127_v33, %v127_v33 }
  0x66   :  { %v234_v37 = vmul.f32 %v233_v35, %v230_v34  ;;  %v236_v38 = vmul.f32 2.0, %v235_v36 }
  0x68   :  { %238 = vst [vmem:[#allocation5 + $0x6] sm:$0x7] %v234_v37  ;;  %v237_v39 = vsub.f32 1.0, %v236_v38  ;;  %v240_v40 = vmul.f32 2.0, %v234_v37  ;;  %v242_v41 = vmul.f32 %v234_v37, %v234_v37 }
  0x6a   :  { %239 = vst [vmem:[#allocation5 + $0x12] sm:$0x7] %v237_v39  ;;  %v241_v1 = vmul.f32 %v240_v40, %v237_v39  ;;  %v243_v42 = vmul.f32 2.0, %v242_v41 }
  0x6c   :  { %245 = vst [vmem:[#allocation5 + $0x9] sm:$0x7] %v241_v1  ;;  %v244_v43 = vsub.f32 1.0, %v243_v42  ;;  %v247_v44 = vmul.f32 2.0, %v241_v1  ;;  %v249_v45 = vmul.f32 %v241_v1, %v241_v1 }
  0x6e   :  { %246 = vst [vmem:[#allocation5 + $0x15] sm:$0x7] %v244_v43  ;;  %v248_v46 = vmul.f32 %v247_v44, %v244_v43  ;;  %v250_v47 = vmul.f32 2.0, %v249_v45 }
  0x70   :  { %252 = vst [vmem:[#allocation5 + $0xc] sm:$0x7] %v248_v46  ;;  %v251_v48 = vsub.f32 1.0, %v250_v47 }
  0x72   :  { %253 = vst [vmem:[#allocation5 + $0x18] sm:$0x7] %v251_v48 }
  0x73   :  { %330 = shalt.err (!%p327_p12)
}
  0x74   :  { %s331_s22 = scalar_lea.hbm %s411_s1, 512 }
  0x75   :  { %p332_p13 = scmp.ne.s32.totalorder %s411_s1, %s331_s22  ;;  %p335_p0 = scmp.lt.u32.totalorder %s331_s22, %s411_s1 }
  0x77   :  { %p337_p1 = pnand %p335_p0, %p332_p13 }
  0x79   :  { %340 = shalt.err (!%p337_p1)
}
  0x7a   :  { %s353_s27 = smov 128   ;;  %s354_s28 = smov 8  }
  0x7b   :  { %265 = dma.vmem_to_hbm [thread:$0]  %s260_s18, 512, %s411_s1, [#allocation4], %s353_s27, %s353_s27, %s354_s28  }
  0x7c   :  { %343 = dma.done.wait [#allocation4], 512  }
  0x7d   :  { %344 = vsyncadd [#allocation4], 4294966784 }
  0x7e   :  { %269 = vsyncpa [#allocation3], 1 }
  0x7f   :  { %270 = vsyncpa [#allocation4], 1 }

</bundles_post_ra>
